<compile_context>
chip_gen: v6e
topology: v6e:2x2x1
jax: 0.10.0
libtpu: 0.0.40
codegen_flags: <defaults>
</compile_context>

<pallas_src>
import functools

import jax
import jax.numpy as jnp
from jax import lax
from jax.experimental import pallas as pl
from jax.experimental.pallas import tpu as pltpu

LANES = 128


def _tpu_kind():
    try:
        return jax.devices()[0].device_kind.lower()
    except Exception:
        return ""


def _hw_params():
    kind = _tpu_kind()
    # Two TensorCores behind one Pallas device: v4 / v5p (megacore), v7x.
    two_tc = any(tag in kind for tag in ("v7", "7x", "v4", "v5p"))
    # v7x needs 2-4 MiB per input block to amortize the ~0.35us per-grid-step overhead;
    # 2048 rows (1 MiB f32) is already >85%-of-roofline on v5e/v6e and safe in 16 MiB
    # scoped VMEM on v5e once the accumulators are (8,128).
    max_rows = 4096 if ("v7" in kind or "7x" in kind) else 2048
    return (2 if two_tc else 1), max_rows


def _dice_bce_partial_kernel(x_ref, t_ref, o_ref,
                             acc_i_ref, acc_s_ref, acc_b_ref,
                             *, nrows, tiles_per_core):
    c = pl.program_id(0)          # core / partial-sum index
    j = pl.program_id(1)          # reduction (tile) index
    br = x_ref.shape[0]
    n8, rtail = divmod(br, 8)     # wrapper guarantees br >= 8

    @pl.when(j == 0)
    def _init():
        acc_i_ref[...] = jnp.zeros_like(acc_i_ref)   # sum(p * t)
        acc_s_ref[...] = jnp.zeros_like(acc_s_ref)   # sum(p) + sum(t)
        acc_b_ref[...] = jnp.zeros_like(acc_b_ref)   # sum(t*log p + (1-t)*log(1-p))

    def _fold(v):
        # (br, 128) -> (8, 128): sublane-aligned vreg adds only (no XLU).
        if rtail == 0:
            return jnp.sum(v.reshape(n8, 8, LANES), axis=0)
        folded = jnp.sum(v[: n8 * 8].reshape(n8, 8, LANES), axis=0)
        keep = lax.broadcasted_iota(jnp.int32, (8, LANES), 0) >= (8 - rtail)
        return folded + jnp.where(keep, v[br - 8:, :], jnp.float32(0.0))

    def _accumulate(x, t):
        # sigmoid + both BCE logs from one exp, one log, one approx reciprocal.
        e = jnp.exp(-jnp.abs(x))                 # in (0, 1]
        d = 1.0 + e
        r = pl.reciprocal(d, approx=True)
        r = r * (2.0 - d * r)                    # one Newton step -> ~exact f32 1/(1+e)
        lp1 = jnp.log(d)                         # log(1 + e) = -log(sigmoid(|x|))
        p = jnp.where(x >= 0.0, r, e * r)        # == sigmoid(x) incl. f32 saturation
        neg100 = jnp.float32(-100.0)
        log_p = jnp.maximum(jnp.minimum(x, 0.0) - lp1, neg100)     # log(sigmoid(x))
        log_1mp = jnp.maximum(jnp.minimum(-x, 0.0) - lp1, neg100)  # log(1 - sigmoid(x))
        # torch.binary_cross_entropy clamp: sigmoid saturates to 1 in f32 -> -100.
        log_1mp = jnp.where(p >= 1.0, neg100, log_1mp)
        acc_i_ref[...] += _fold(p * t)
        acc_s_ref[...] += _fold(p + t)
        acc_b_ref[...] += _fold(t * (log_p - log_1mp) + log_1mp)

    tile_start = (c * tiles_per_core + j) * br
    is_full = tile_start + br <= nrows

    @pl.when(is_full)
    def _full_tile():
        # Hot path: no masking at all.
        _accumulate(x_ref[...].astype(jnp.float32), t_ref[...].astype(jnp.float32))

    @pl.when(jnp.logical_not(is_full))
    def _ragged_tile():
        # Cold path: last partial tile or a duplicated (clamped) over-the-end tile.
        # Neutral fill x=-1e9, t=0 contributes exactly 0 (and kills OOB garbage/NaN).
        row = lax.broadcasted_iota(jnp.int32, (br, LANES), 0)
        valid = row < (nrows - tile_start)
        x = jnp.where(valid, x_ref[...].astype(jnp.float32), jnp.float32(-1e9))
        t = jnp.where(valid, t_ref[...].astype(jnp.float32), jnp.float32(0.0))
        _accumulate(x, t)

    @pl.when(j == pl.num_programs(1) - 1)
    def _finalize():
        inter = jnp.sum(acc_i_ref[...])
        ssum = jnp.sum(acc_s_ref[...])
        bsum = jnp.sum(acc_b_ref[...])
        orow = lax.broadcasted_iota(jnp.int32, (8, LANES), 0)
        olane = lax.broadcasted_iota(jnp.int32, (8, LANES), 1)
        tile = jnp.zeros((8, LANES), jnp.float32)
        tile = jnp.where((orow == 0) & (olane == 0), inter, tile)
        tile = jnp.where((orow == 0) & (olane == 1), ssum, tile)
        tile = jnp.where((orow == 0) & (olane == 2), bsum, tile)
        o_ref[...] = tile


def _sums_f32(x, t):
    """Reference-style partial sums (intersection, p-sum + t-sum, sum of -BCE terms)."""
    x = x.astype(jnp.float32)
    t = t.astype(jnp.float32)
    p = jax.nn.sigmoid(x)
    log_p = jnp.maximum(jnp.log(p), -100.0)
    log_1mp = jnp.maximum(jnp.log(1.0 - p), -100.0)
    return (jnp.sum(p * t),
            jnp.sum(p) + jnp.sum(t),
            jnp.sum(t * log_p + (1.0 - t) * log_1mp))


def dice_bce_loss(inputs, targets, smooth=1.0):
    """inputs: raw logits (any shape / float dtype); targets: same shape (0/1)."""
    assert inputs.shape == targets.shape
    n_valid = 1
    for d in inputs.shape:
        n_valid *= int(d)

    x_flat = inputs.reshape(-1)
    t_flat = targets.reshape(-1)
    nrows, rem = divmod(n_valid, LANES)

    if nrows < 8:
        # Tiny input: a couple of vregs worth of work -> pure JAX.
        inter, ssum, bsum = _sums_f32(x_flat, t_flat)
    else:
        if rem:
            # <128-element ragged tail handled JAX-side (a handful of flops), so the
            # kernel never needs a lane-level mask.
            tail_i, tail_s, tail_b = _sums_f32(x_flat[nrows * LANES:],
                                               t_flat[nrows * LANES:])
            # TODO(synk): this bulk prefix slice still materializes one copy when the
            # element count is not a multiple of 128; a zero-copy ragged path would
            # need manual HBM DMA.
            x_bulk = x_flat[: nrows * LANES]
            t_bulk = t_flat[: nrows * LANES]
        else:
            tail_i = tail_s = tail_b = jnp.float32(0.0)
            x_bulk = x_flat           # zero-copy: reshape only
            t_bulk = t_flat

        x2 = x_bulk.reshape(nrows, LANES)
        t2 = t_bulk.reshape(nrows, LANES)

        ncores, max_rows = _hw_params()
        br = nrows if nrows <= max_rows else max_rows   # full-dims block or multiple of 8
        nblocks = pl.cdiv(nrows, br)
        ncores = max(1, min(ncores, nblocks))
        tiles_per_core = pl.cdiv(nblocks, ncores)

        def in_map(c, j):
            # Clamp keeps every DMA in bounds; duplicated over-the-end tiles are fully
            # masked in-kernel and contribute exactly zero.
            return (jnp.minimum(c * tiles_per_core + j, nblocks - 1), 0)

        kernel = functools.partial(_dice_bce_partial_kernel,
                                   nrows=nrows, tiles_per_core=tiles_per_core)

        out = pl.pallas_call(
            kernel,
            out_shape=jax.ShapeDtypeStruct((ncores * 8, LANES), jnp.float32),
            grid_spec=pltpu.PrefetchScalarGridSpec(
                num_scalar_prefetch=0,
                grid=(ncores, tiles_per_core),
                in_specs=[
                    # TODO(synk): sweep pipeline_mode=pl.Buffered(3) on v7x if the
                    # trace still shows exposed DMA between steps.
                    pl.BlockSpec((br, LANES), in_map),
                    pl.BlockSpec((br, LANES), in_map),
                ],
                out_specs=pl.BlockSpec((8, LANES), lambda c, j: (c, 0)),
                scratch_shapes=[
                    pltpu.VMEM((8, LANES), jnp.float32),
                    pltpu.VMEM((8, LANES), jnp.float32),
                    pltpu.VMEM((8, LANES), jnp.float32),
                ],
            ),
            compiler_params=pltpu.CompilerParams(
                # "parallel" shards the partial-sum axis across TensorCores where the
                # hardware has more than one; on single-TC chips ncores == 1 anyway.
                dimension_semantics=("parallel", "arbitrary"),
            ),
        )(x2, t2)

        parts = out.reshape(ncores, 8, LANES)[:, 0, :3]
        inter = parts[:, 0].sum() + tail_i
        ssum = parts[:, 1].sum() + tail_s
        bsum = parts[:, 2].sum() + tail_b

    smooth = jnp.float32(smooth)
    dice_loss = 1.0 - (2.0 * inter + smooth) / (ssum + smooth)
    bce = -bsum / jnp.float32(n_valid)
    return bce + dice_loss


def dice_bce_loss_ref(inputs, targets, smooth=1.0):
    """Pure-JAX reference mirroring the PyTorch forward (sigmoid + BCE with -100 clamp)."""
    p = jax.nn.sigmoid(inputs.astype(jnp.float32)).reshape(-1)
    t = targets.astype(jnp.float32).reshape(-1)
    inter = jnp.sum(p * t)
    dice = 1.0 - (2.0 * inter + smooth) / (jnp.sum(p) + jnp.sum(t) + smooth)
    log_p = jnp.maximum(jnp.log(p), -100.0)
    log_1mp = jnp.maximum(jnp.log(1.0 - p), -100.0)
    bce = jnp.mean(-(t * log_p + (1.0 - t) * log_1mp))
    return bce + dice


if __name__ == "__main__":
    key = jax.random.PRNGKey(0)
    k1, k2, k3, k4, k5, k6 = jax.random.split(key, 6)

    # Small NCHW logits and binary targets (single full block).
    x = jax.random.normal(k1, (2, 4, 16, 16), dtype=jnp.float32)
    t = (jax.random.uniform(k2, (2, 4, 16, 16)) > 0.5).astype(jnp.float32)
    loss = jax.block_until_ready(dice_bce_loss(x, t, smooth=1.0))
    ref = jax.block_until_ready(dice_bce_loss_ref(x, t, smooth=1.0))
    assert jnp.isfinite(loss)
    assert abs(float(loss) - float(ref)) < 1e-4, (float(loss), float(ref))

    # Larger case exercising multi-block accumulation (and the 2-way split on 2-TC chips).
    x2 = 4.0 * jax.random.normal(k3, (2, 4, 256, 256), dtype=jnp.float32)
    t2 = (jax.random.uniform(k4, (2, 4, 256, 256)) > 0.5).astype(jnp.float32)
    loss2 = jax.block_until_ready(dice_bce_loss(x2, t2, smooth=1.0))
    ref2 = jax.block_until_ready(dice_bce_loss_ref(x2, t2, smooth=1.0))
    assert jnp.isfinite(loss2)
    assert abs(float(loss2) - float(ref2)) < 1e-3, (float(loss2), float(ref2))

    # Ragged element count (not a multiple of 128): bulk through the kernel,
    # <128-element tail folded in on the JAX side.
    x3 = jax.random.normal(k5, (3, 700), dtype=jnp.float32)
    t3 = (jax.random.uniform(k6, (3, 700)) > 0.5).astype(jnp.float32)
    loss3 = jax.block_until_ready(dice_bce_loss(x3, t3, smooth=1.0))
    ref3 = jax.block_until_ready(dice_bce_loss_ref(x3, t3, smooth=1.0))
    assert jnp.isfinite(loss3)
    assert abs(float(loss3) - float(ref3)) < 1e-4, (float(loss3), float(ref3))

    print("KERNEL_OK")
</pallas_src>

<mosaic_0001>
module attributes {stable_mosaic.version = 11 : i64} {
  func.func @_dice_bce_partial_kernel(%arg0: i32, %arg1: i32, %arg2: memref<16x128xf32, #tpu.memory_space<vmem>>, %arg3: memref<16x128xf32, #tpu.memory_space<vmem>>, %arg4: memref<8x128xf32, #tpu.memory_space<vmem>>, %arg5: memref<8x128xf32, #tpu.memory_space<vmem>>, %arg6: memref<8x128xf32, #tpu.memory_space<vmem>>, %arg7: memref<8x128xf32, #tpu.memory_space<vmem>>) attributes {dimension_semantics = [#tpu.dimension_semantics<parallel>, #tpu.dimension_semantics<arbitrary>], iteration_bounds = array<i64: 1, 1>, scalar_prefetch = 0 : i64, scratch_operands = 3 : i64, tpu.core_type = #tpu.core_type<tc>, window_params = [{transform_indices = @transform_0, window_bounds = array<i64: 16, 128>}, {transform_indices = @transform_1, window_bounds = array<i64: 16, 128>}, {transform_indices = @transform_2, window_bounds = array<i64: 8, 128>}]} {
    %c0_i32 = arith.constant 0 : i32
    %0 = arith.cmpi eq, %arg1, %c0_i32 : i32
    %1 = arith.extui %0 : i1 to i32
    %c0_i32_0 = arith.constant 0 : i32
    %2 = arith.cmpi ne, %1, %c0_i32_0 : i32
    scf.if %2 {
      %cst = arith.constant 0.000000e+00 : f32
      %16 = vector.broadcast %cst : f32 to vector<8x128xf32>
      %c0 = arith.constant 0 : index
      %c0_7 = arith.constant 0 : index
      %17 = vector.load %arg5[%c0, %c0_7] : memref<8x128xf32, #tpu.memory_space<vmem>>, vector<8x128xf32>
      tpu.vector_store %arg5[%c0, %c0_7], %16 {strides = array<i32>} : memref<8x128xf32, #tpu.memory_space<vmem>>, vector<8x128xf32>,
      %cst_8 = arith.constant 0.000000e+00 : f32
      %18 = vector.broadcast %cst_8 : f32 to vector<8x128xf32>
      %c0_9 = arith.constant 0 : index
      %c0_10 = arith.constant 0 : index
      %19 = vector.load %arg6[%c0_9, %c0_10] : memref<8x128xf32, #tpu.memory_space<vmem>>, vector<8x128xf32>
      tpu.vector_store %arg6[%c0_9, %c0_10], %18 {strides = array<i32>} : memref<8x128xf32, #tpu.memory_space<vmem>>, vector<8x128xf32>,
      %cst_11 = arith.constant 0.000000e+00 : f32
      %20 = vector.broadcast %cst_11 : f32 to vector<8x128xf32>
      %c0_12 = arith.constant 0 : index
      %c0_13 = arith.constant 0 : index
      %21 = vector.load %arg7[%c0_12, %c0_13] : memref<8x128xf32, #tpu.memory_space<vmem>>, vector<8x128xf32>
      tpu.vector_store %arg7[%c0_12, %c0_13], %20 {strides = array<i32>} : memref<8x128xf32, #tpu.memory_space<vmem>>, vector<8x128xf32>,
    } else {
    }
    %c1_i32 = arith.constant 1 : i32
    %3 = arith.muli %arg0, %c1_i32 : i32
    %4 = arith.addi %3, %arg1 : i32
    %c16_i32 = arith.constant 16 : i32
    %5 = arith.muli %4, %c16_i32 : i32
    %c16_i32_1 = arith.constant 16 : i32
    %6 = arith.addi %5, %c16_i32_1 : i32
    %c16_i32_2 = arith.constant 16 : i32
    %7 = arith.cmpi sle, %6, %c16_i32_2 : i32
    %8 = arith.extui %7 : i1 to i32
    %c0_i32_3 = arith.constant 0 : i32
    %9 = arith.cmpi ne, %8, %c0_i32_3 : i32
    scf.if %9 {
      %c0 = arith.constant 0 : index
      %c0_7 = arith.constant 0 : index
      %16 = vector.load %arg2[%c0, %c0_7] : memref<16x128xf32, #tpu.memory_space<vmem>>, vector<16x128xf32>
      %c0_8 = arith.constant 0 : index
      %c0_9 = arith.constant 0 : index
      %17 = vector.load %arg3[%c0_8, %c0_9] : memref<16x128xf32, #tpu.memory_space<vmem>>, vector<16x128xf32>
      %18 = math.absf %16 : vector<16x128xf32>
      %cst = arith.constant 0.000000e+00 : f32
      %19 = vector.broadcast %cst : f32 to vector<16x128xf32>
      %20 = arith.subf %19, %18 : vector<16x128xf32>
      %21 = math.exp %20 : vector<16x128xf32>
      %cst_10 = arith.constant 1.000000e+00 : f32
      %22 = vector.broadcast %cst_10 : f32 to vector<16x128xf32>
      %23 = arith.addf %22, %21 : vector<16x128xf32>
      %24 = tpu.reciprocal %23 {approx = true} : vector<16x128xf32> -> vector<16x128xf32>
      %25 = arith.mulf %23, %24 : vector<16x128xf32>
      %cst_11 = arith.constant 2.000000e+00 : f32
      %26 = vector.broadcast %cst_11 : f32 to vector<16x128xf32>
      %27 = arith.subf %26, %25 : vector<16x128xf32>
      %28 = arith.mulf %24, %27 : vector<16x128xf32>
      %29 = math.log %23 : vector<16x128xf32>
      %cst_12 = arith.constant 0.000000e+00 : f32
      %30 = vector.broadcast %cst_12 : f32 to vector<16x128xf32>
      %31 = arith.cmpf oge, %16, %30 : vector<16x128xf32>
      %32 = arith.mulf %21, %28 : vector<16x128xf32>
      %33 = arith.select %31, %28, %32 : vector<16x128xi1>, vector<16x128xf32>
      %cst_13 = arith.constant 0.000000e+00 : f32
      %34 = vector.broadcast %cst_13 : f32 to vector<16x128xf32>
      %35 = arith.minimumf %16, %34 : vector<16x128xf32>
      %36 = arith.subf %35, %29 : vector<16x128xf32>
      %cst_14 = arith.constant -1.000000e+02 : f32
      %37 = vector.broadcast %cst_14 : f32 to vector<16x128xf32>
      %38 = arith.maximumf %36, %37 : vector<16x128xf32>
      %cst_15 = arith.constant 0.000000e+00 : f32
      %39 = vector.broadcast %cst_15 : f32 to vector<16x128xf32>
      %40 = arith.subf %39, %16 : vector<16x128xf32>
      %cst_16 = arith.constant 0.000000e+00 : f32
      %41 = vector.broadcast %cst_16 : f32 to vector<16x128xf32>
      %42 = arith.minimumf %40, %41 : vector<16x128xf32>
      %43 = arith.subf %42, %29 : vector<16x128xf32>
      %cst_17 = arith.constant -1.000000e+02 : f32
      %44 = vector.broadcast %cst_17 : f32 to vector<16x128xf32>
      %45 = arith.maximumf %43, %44 : vector<16x128xf32>
      %cst_18 = arith.constant 1.000000e+00 : f32
      %46 = vector.broadcast %cst_18 : f32 to vector<16x128xf32>
      %47 = arith.cmpf oge, %33, %46 : vector<16x128xf32>
      %cst_19 = arith.constant -1.000000e+02 : f32
      %48 = vector.broadcast %cst_19 : f32 to vector<16x128xf32>
      %49 = arith.select %47, %48, %45 : vector<16x128xi1>, vector<16x128xf32>
      %c0_20 = arith.constant 0 : index
      %c0_21 = arith.constant 0 : index
      %50 = vector.load %arg5[%c0_20, %c0_21] : memref<8x128xf32, #tpu.memory_space<vmem>>, vector<8x128xf32>
      %51 = arith.mulf %33, %17 : vector<16x128xf32>
      %52 = vector.shape_cast %51 : vector<16x128xf32> to vector<2x8x128xf32>
      %cst_22 = arith.constant dense<0.000000e+00> : vector<8x128xf32>
      %53 = vector.multi_reduction <add>, %52, %cst_22 [0] : vector<2x8x128xf32> to vector<8x128xf32>
      %54 = arith.addf %50, %53 : vector<8x128xf32>
      %c0_23 = arith.constant 0 : index
      %c0_24 = arith.constant 0 : index
      %55 = vector.load %arg5[%c0_23, %c0_24] : memref<8x128xf32, #tpu.memory_space<vmem>>, vector<8x128xf32>
      tpu.vector_store %arg5[%c0_23, %c0_24], %54 {strides = array<i32>} : memref<8x128xf32, #tpu.memory_space<vmem>>, vector<8x128xf32>,
      %c0_25 = arith.constant 0 : index
      %c0_26 = arith.constant 0 : index
      %56 = vector.load %arg6[%c0_25, %c0_26] : memref<8x128xf32, #tpu.memory_space<vmem>>, vector<8x128xf32>
      %57 = arith.addf %33, %17 : vector<16x128xf32>
      %58 = vector.shape_cast %57 : vector<16x128xf32> to vector<2x8x128xf32>
      %cst_27 = arith.constant dense<0.000000e+00> : vector<8x128xf32>
      %59 = vector.multi_reduction <add>, %58, %cst_27 [0] : vector<2x8x128xf32> to vector<8x128xf32>
      %60 = arith.addf %56, %59 : vector<8x128xf32>
      %c0_28 = arith.constant 0 : index
      %c0_29 = arith.constant 0 : index
      %61 = vector.load %arg6[%c0_28, %c0_29] : memref<8x128xf32, #tpu.memory_space<vmem>>, vector<8x128xf32>
      tpu.vector_store %arg6[%c0_28, %c0_29], %60 {strides = array<i32>} : memref<8x128xf32, #tpu.memory_space<vmem>>, vector<8x128xf32>,
      %c0_30 = arith.constant 0 : index
      %c0_31 = arith.constant 0 : index
      %62 = vector.load %arg7[%c0_30, %c0_31] : memref<8x128xf32, #tpu.memory_space<vmem>>, vector<8x128xf32>
      %63 = arith.subf %38, %49 : vector<16x128xf32>
      %64 = arith.mulf %17, %63 : vector<16x128xf32>
      %65 = arith.addf %64, %49 : vector<16x128xf32>
      %66 = vector.shape_cast %65 : vector<16x128xf32> to vector<2x8x128xf32>
      %cst_32 = arith.constant dense<0.000000e+00> : vector<8x128xf32>
      %67 = vector.multi_reduction <add>, %66, %cst_32 [0] : vector<2x8x128xf32> to vector<8x128xf32>
      %68 = arith.addf %62, %67 : vector<8x128xf32>
      %c0_33 = arith.constant 0 : index
      %c0_34 = arith.constant 0 : index
      %69 = vector.load %arg7[%c0_33, %c0_34] : memref<8x128xf32, #tpu.memory_space<vmem>>, vector<8x128xf32>
      tpu.vector_store %arg7[%c0_33, %c0_34], %68 {strides = array<i32>} : memref<8x128xf32, #tpu.memory_space<vmem>>, vector<8x128xf32>,
    } else {
    }
    %true = arith.constant true
    %10 = arith.xori %7, %true : i1
    %11 = arith.extui %10 : i1 to i32
    %c0_i32_4 = arith.constant 0 : i32
    %12 = arith.cmpi ne, %11, %c0_i32_4 : i32
    scf.if %12 {
      %16 = tpu.iota {dimensions = array<i32: 0>} : vector<16x128xi32>
      %c16_i32_7 = arith.constant 16 : i32
      %17 = arith.subi %c16_i32_7, %5 : i32
      %18 = vector.broadcast %17 : i32 to vector<16x128xi32>
      %19 = arith.cmpi slt, %16, %18 : vector<16x128xi32>
      %c0 = arith.constant 0 : index
      %c0_8 = arith.constant 0 : index
      %20 = vector.load %arg2[%c0, %c0_8] : memref<16x128xf32, #tpu.memory_space<vmem>>, vector<16x128xf32>
      %cst = arith.constant -1.000000e+09 : f32
      %21 = vector.broadcast %cst : f32 to vector<16x128xf32>
      %22 = arith.select %19, %20, %21 : vector<16x128xi1>, vector<16x128xf32>
      %c0_9 = arith.constant 0 : index
      %c0_10 = arith.constant 0 : index
      %23 = vector.load %arg3[%c0_9, %c0_10] : memref<16x128xf32, #tpu.memory_space<vmem>>, vector<16x128xf32>
      %cst_11 = arith.constant 0.000000e+00 : f32
      %24 = vector.broadcast %cst_11 : f32 to vector<16x128xf32>
      %25 = arith.select %19, %23, %24 : vector<16x128xi1>, vector<16x128xf32>
      %26 = math.absf %22 : vector<16x128xf32>
      %cst_12 = arith.constant 0.000000e+00 : f32
      %27 = vector.broadcast %cst_12 : f32 to vector<16x128xf32>
      %28 = arith.subf %27, %26 : vector<16x128xf32>
      %29 = math.exp %28 : vector<16x128xf32>
      %cst_13 = arith.constant 1.000000e+00 : f32
      %30 = vector.broadcast %cst_13 : f32 to vector<16x128xf32>
      %31 = arith.addf %30, %29 : vector<16x128xf32>
      %32 = tpu.reciprocal %31 {approx = true} : vector<16x128xf32> -> vector<16x128xf32>
      %33 = arith.mulf %31, %32 : vector<16x128xf32>
      %cst_14 = arith.constant 2.000000e+00 : f32
      %34 = vector.broadcast %cst_14 : f32 to vector<16x128xf32>
      %35 = arith.subf %34, %33 : vector<16x128xf32>
      %36 = arith.mulf %32, %35 : vector<16x128xf32>
      %37 = math.log %31 : vector<16x128xf32>
      %cst_15 = arith.constant 0.000000e+00 : f32
      %38 = vector.broadcast %cst_15 : f32 to vector<16x128xf32>
      %39 = arith.cmpf oge, %22, %38 : vector<16x128xf32>
      %40 = arith.mulf %29, %36 : vector<16x128xf32>
      %41 = arith.select %39, %36, %40 : vector<16x128xi1>, vector<16x128xf32>
      %cst_16 = arith.constant 0.000000e+00 : f32
      %42 = vector.broadcast %cst_16 : f32 to vector<16x128xf32>
      %43 = arith.minimumf %22, %42 : vector<16x128xf32>
      %44 = arith.subf %43, %37 : vector<16x128xf32>
      %cst_17 = arith.constant -1.000000e+02 : f32
      %45 = vector.broadcast %cst_17 : f32 to vector<16x128xf32>
      %46 = arith.maximumf %44, %45 : vector<16x128xf32>
      %cst_18 = arith.constant 0.000000e+00 : f32
      %47 = vector.broadcast %cst_18 : f32 to vector<16x128xf32>
      %48 = arith.subf %47, %22 : vector<16x128xf32>
      %cst_19 = arith.constant 0.000000e+00 : f32
      %49 = vector.broadcast %cst_19 : f32 to vector<16x128xf32>
      %50 = arith.minimumf %48, %49 : vector<16x128xf32>
      %51 = arith.subf %50, %37 : vector<16x128xf32>
      %cst_20 = arith.constant -1.000000e+02 : f32
      %52 = vector.broadcast %cst_20 : f32 to vector<16x128xf32>
      %53 = arith.maximumf %51, %52 : vector<16x128xf32>
      %cst_21 = arith.constant 1.000000e+00 : f32
      %54 = vector.broadcast %cst_21 : f32 to vector<16x128xf32>
      %55 = arith.cmpf oge, %41, %54 : vector<16x128xf32>
      %cst_22 = arith.constant -1.000000e+02 : f32
      %56 = vector.broadcast %cst_22 : f32 to vector<16x128xf32>
      %57 = arith.select %55, %56, %53 : vector<16x128xi1>, vector<16x128xf32>
      %c0_23 = arith.constant 0 : index
      %c0_24 = arith.constant 0 : index
      %58 = vector.load %arg5[%c0_23, %c0_24] : memref<8x128xf32, #tpu.memory_space<vmem>>, vector<8x128xf32>
      %59 = arith.mulf %41, %25 : vector<16x128xf32>
      %60 = vector.shape_cast %59 : vector<16x128xf32> to vector<2x8x128xf32>
      %cst_25 = arith.constant dense<0.000000e+00> : vector<8x128xf32>
      %61 = vector.multi_reduction <add>, %60, %cst_25 [0] : vector<2x8x128xf32> to vector<8x128xf32>
      %62 = arith.addf %58, %61 : vector<8x128xf32>
      %c0_26 = arith.constant 0 : index
      %c0_27 = arith.constant 0 : index
      %63 = vector.load %arg5[%c0_26, %c0_27] : memref<8x128xf32, #tpu.memory_space<vmem>>, vector<8x128xf32>
      tpu.vector_store %arg5[%c0_26, %c0_27], %62 {strides = array<i32>} : memref<8x128xf32, #tpu.memory_space<vmem>>, vector<8x128xf32>,
      %c0_28 = arith.constant 0 : index
      %c0_29 = arith.constant 0 : index
      %64 = vector.load %arg6[%c0_28, %c0_29] : memref<8x128xf32, #tpu.memory_space<vmem>>, vector<8x128xf32>
      %65 = arith.addf %41, %25 : vector<16x128xf32>
      %66 = vector.shape_cast %65 : vector<16x128xf32> to vector<2x8x128xf32>
      %cst_30 = arith.constant dense<0.000000e+00> : vector<8x128xf32>
      %67 = vector.multi_reduction <add>, %66, %cst_30 [0] : vector<2x8x128xf32> to vector<8x128xf32>
      %68 = arith.addf %64, %67 : vector<8x128xf32>
      %c0_31 = arith.constant 0 : index
      %c0_32 = arith.constant 0 : index
      %69 = vector.load %arg6[%c0_31, %c0_32] : memref<8x128xf32, #tpu.memory_space<vmem>>, vector<8x128xf32>
      tpu.vector_store %arg6[%c0_31, %c0_32], %68 {strides = array<i32>} : memref<8x128xf32, #tpu.memory_space<vmem>>, vector<8x128xf32>,
      %c0_33 = arith.constant 0 : index
      %c0_34 = arith.constant 0 : index
      %70 = vector.load %arg7[%c0_33, %c0_34] : memref<8x128xf32, #tpu.memory_space<vmem>>, vector<8x128xf32>
      %71 = arith.subf %46, %57 : vector<16x128xf32>
      %72 = arith.mulf %25, %71 : vector<16x128xf32>
      %73 = arith.addf %72, %57 : vector<16x128xf32>
      %74 = vector.shape_cast %73 : vector<16x128xf32> to vector<2x8x128xf32>
      %cst_35 = arith.constant dense<0.000000e+00> : vector<8x128xf32>
      %75 = vector.multi_reduction <add>, %74, %cst_35 [0] : vector<2x8x128xf32> to vector<8x128xf32>
      %76 = arith.addf %70, %75 : vector<8x128xf32>
      %c0_36 = arith.constant 0 : index
      %c0_37 = arith.constant 0 : index
      %77 = vector.load %arg7[%c0_36, %c0_37] : memref<8x128xf32, #tpu.memory_space<vmem>>, vector<8x128xf32>
      tpu.vector_store %arg7[%c0_36, %c0_37], %76 {strides = array<i32>} : memref<8x128xf32, #tpu.memory_space<vmem>>, vector<8x128xf32>,
    } else {
    }
    %c0_i32_5 = arith.constant 0 : i32
    %13 = arith.cmpi eq, %arg1, %c0_i32_5 : i32
    %14 = arith.extui %13 : i1 to i32
    %c0_i32_6 = arith.constant 0 : i32
    %15 = arith.cmpi ne, %14, %c0_i32_6 : i32
    scf.if %15 {
      %c0 = arith.constant 0 : index
      %c0_7 = arith.constant 0 : index
      %16 = vector.load %arg5[%c0, %c0_7] : memref<8x128xf32, #tpu.memory_space<vmem>>, vector<8x128xf32>
      %17 = vector.shape_cast %16 : vector<8x128xf32> to vector<1x8x128xf32>
      %cst = arith.constant dense<0.000000e+00> : vector<1xf32>
      %18 = vector.multi_reduction <add>, %17, %cst [1, 2] : vector<1x8x128xf32> to vector<1xf32>
      %19 = vector.shape_cast %18 : vector<1xf32> to vector<1x1x1xf32>
      %20 = vector.extract %19[0, 0, 0] : f32 from vector<1x1x1xf32>
      %c0_8 = arith.constant 0 : index
      %c0_9 = arith.constant 0 : index
      %21 = vector.load %arg6[%c0_8, %c0_9] : memref<8x128xf32, #tpu.memory_space<vmem>>, vector<8x128xf32>
      %22 = vector.shape_cast %21 : vector<8x128xf32> to vector<1x8x128xf32>
      %cst_10 = arith.constant dense<0.000000e+00> : vector<1xf32>
      %23 = vector.multi_reduction <add>, %22, %cst_10 [1, 2] : vector<1x8x128xf32> to vector<1xf32>
      %24 = vector.shape_cast %23 : vector<1xf32> to vector<1x1x1xf32>
      %25 = vector.extract %24[0, 0, 0] : f32 from vector<1x1x1xf32>
      %c0_11 = arith.constant 0 : index
      %c0_12 = arith.constant 0 : index
      %26 = vector.load %arg7[%c0_11, %c0_12] : memref<8x128xf32, #tpu.memory_space<vmem>>, vector<8x128xf32>
      %27 = vector.shape_cast %26 : vector<8x128xf32> to vector<1x8x128xf32>
      %cst_13 = arith.constant dense<0.000000e+00> : vector<1xf32>
      %28 = vector.multi_reduction <add>, %27, %cst_13 [1, 2] : vector<1x8x128xf32> to vector<1xf32>
      %29 = vector.shape_cast %28 : vector<1xf32> to vector<1x1x1xf32>
      %30 = vector.extract %29[0, 0, 0] : f32 from vector<1x1x1xf32>
      %31 = tpu.iota {dimensions = array<i32: 0>} : vector<8x128xi32>
      %32 = tpu.iota {dimensions = array<i32: 1>} : vector<8x128xi32>
      %cst_14 = arith.constant 0.000000e+00 : f32
      %33 = vector.broadcast %cst_14 : f32 to vector<8x128xf32>
      %c0_i32_15 = arith.constant 0 : i32
      %34 = vector.broadcast %c0_i32_15 : i32 to vector<8x128xi32>
      %35 = arith.cmpi eq, %31, %34 : vector<8x128xi32>
      %c0_i32_16 = arith.constant 0 : i32
      %36 = vector.broadcast %c0_i32_16 : i32 to vector<8x128xi32>
      %37 = arith.cmpi eq, %32, %36 : vector<8x128xi32>
      %38 = arith.andi %35, %37 : vector<8x128xi1>
      %39 = vector.broadcast %20 : f32 to vector<8x128xf32>
      %40 = arith.select %38, %39, %33 : vector<8x128xi1>, vector<8x128xf32>
      %c0_i32_17 = arith.constant 0 : i32
      %41 = vector.broadcast %c0_i32_17 : i32 to vector<8x128xi32>
      %42 = arith.cmpi eq, %31, %41 : vector<8x128xi32>
      %c1_i32_18 = arith.constant 1 : i32
      %43 = vector.broadcast %c1_i32_18 : i32 to vector<8x128xi32>
      %44 = arith.cmpi eq, %32, %43 : vector<8x128xi32>
      %45 = arith.andi %42, %44 : vector<8x128xi1>
      %46 = vector.broadcast %25 : f32 to vector<8x128xf32>
      %47 = arith.select %45, %46, %40 : vector<8x128xi1>, vector<8x128xf32>
      %c0_i32_19 = arith.constant 0 : i32
      %48 = vector.broadcast %c0_i32_19 : i32 to vector<8x128xi32>
      %49 = arith.cmpi eq, %31, %48 : vector<8x128xi32>
      %c2_i32 = arith.constant 2 : i32
      %50 = vector.broadcast %c2_i32 : i32 to vector<8x128xi32>
      %51 = arith.cmpi eq, %32, %50 : vector<8x128xi32>
      %52 = arith.andi %49, %51 : vector<8x128xi1>
      %53 = vector.broadcast %30 : f32 to vector<8x128xf32>
      %54 = arith.select %52, %53, %47 : vector<8x128xi1>, vector<8x128xf32>
      %c0_20 = arith.constant 0 : index
      %c0_21 = arith.constant 0 : index
      %55 = vector.load %arg4[%c0_20, %c0_21] : memref<8x128xf32, #tpu.memory_space<vmem>>, vector<8x128xf32>
      tpu.vector_store %arg4[%c0_20, %c0_21], %54 {strides = array<i32>} : memref<8x128xf32, #tpu.memory_space<vmem>>, vector<8x128xf32>,
    } else {
    }
    return
  }
  func.func @transform_0(%arg0: i32, %arg1: i32) -> (i32, i32) {
    %c1_i32 = arith.constant 1 : i32
    %0 = arith.muli %arg0, %c1_i32 : i32
    %1 = arith.addi %0, %arg1 : i32
    %c0_i32 = arith.constant 0 : i32
    %2 = arith.minsi %1, %c0_i32 : i32
    %c0_i32_0 = arith.constant 0 : i32
    %c0_i32_1 = arith.constant 0 : i32
    return %2, %c0_i32_0 : i32, i32
  }
  func.func @transform_1(%arg0: i32, %arg1: i32) -> (i32, i32) {
    %c1_i32 = arith.constant 1 : i32
    %0 = arith.muli %arg0, %c1_i32 : i32
    %1 = arith.addi %0, %arg1 : i32
    %c0_i32 = arith.constant 0 : i32
    %2 = arith.minsi %1, %c0_i32 : i32
    %c0_i32_0 = arith.constant 0 : i32
    %c0_i32_1 = arith.constant 0 : i32
    return %2, %c0_i32_0 : i32, i32
  }
  func.func @transform_2(%arg0: i32, %arg1: i32) -> (i32, i32) {
    %c0_i32 = arith.constant 0 : i32
    %c0_i32_0 = arith.constant 0 : i32
    return %arg0, %c0_i32 : i32, i32
  }
}

</mosaic_0001>

<bundles_post_ra>
// kernel: tpu_custom_call.1
= control target key start
LH: loop header
LB: loop body
LE: loop exit
PB: predicated region body
PF: predicated region fallthrough
CT: control target
= control target key end

     0   :  { %7 = vsyncpa [#allocation6], 0  ;;  %s422_s0 = inlined_call_operand.hbm [shape: f32[16,128], index: 0, kind: input, shape index: {}]   ;;  %s423_s1 = inlined_call_operand.hbm [shape: f32[16,128], index: 1, kind: input, shape index: {}]   ;;  %s424_s2 = inlined_call_operand.hbm [shape: f32[8,128], index: 2, kind: output, shape index: {}]  }
   0x1   :  { %8 = vsyncpa [#allocation9], 0 }
   0x2   :  { %9 = vsyncpa [#allocation7], 0  ;;  %s393_s9 = smov [#allocation5]  }
   0x3   :  { %s21_s10 = sshll.u32 %s393_s9, 4  ;;  %s22_s10 = int_to_ptr.vmem [resolvable:$true] %s21_s10 }
   0x4   :  { %s335_s11 = scalar_lea.vmem %s22_s10, 256  ;;  %p340_p1 = scmp.lt.s32.totalorder %s22_s10, %s22_s10 }
   0x5   :  { %p336_p0 = scmp.ne.s32.totalorder %s22_s10, %s335_s11  ;;  %p341_p2 = scmp.lt.s32.totalorder %s335_s11, %s335_s11 }
   0x7   :  { %p342_p3 = por %p341_p2, %p340_p1 }
   0x9   :  { %p343_p4 = pnand %p342_p3, %p336_p0 }
   0xb   :  { %346 = shalt.err (!%p343_p4)
}
   0xc   :  { %s394_s12 = smov 128   ;;  %s395_s13 = smov 8  }
   0xd   :  { %27 = dma.hbm_to_vmem [thread:$0]  %s422_s0, 256, %s22_s10, [#allocation6], %s394_s12, %s394_s12, %s395_s13  }
   0xe   :  { %s396_s16 = smov [#allocation8]  }
   0xf   :  { %s39_s17 = sshll.u32 %s396_s16, 4  ;;  %s40_s17 = int_to_ptr.vmem [resolvable:$true] %s39_s17 }
  0x10   :  { %s355_s18 = scalar_lea.vmem %s40_s17, 256  ;;  %p360_p6 = scmp.lt.s32.totalorder %s40_s17, %s40_s17 }
  0x11   :  { %p356_p5 = scmp.ne.s32.totalorder %s40_s17, %s355_s18  ;;  %p361_p7 = scmp.lt.s32.totalorder %s355_s18, %s355_s18 }
  0x13   :  { %p362_p8 = por %p361_p7, %p360_p6 }
  0x15   :  { %p363_p9 = pnand %p362_p8, %p356_p5 }
  0x17   :  { %366 = shalt.err (!%p363_p9)
}
  0x18   :  { %45 = dma.hbm_to_vmem [thread:$0]  %s423_s1, 256, %s40_s17, [#allocation9], %s394_s12, %s394_s12, %s395_s13  }
  0x19   :  { %387 = dma.done.wait [#allocation6], 256  }
  0x1a   :  { %388 = vsyncadd [#allocation6], 4294967040 }
  0x1b   :  { %389 = dma.done.wait [#allocation9], 256  }
  0x1c   :  { %390 = vsyncadd [#allocation9], 4294967040  ;;  %v74_v0 = vld [vmem:[#allocation5] sm:$0xff]  ;;  %v75_v1 = vld [vmem:[#allocation5 + $0x8] sm:$0xff]  ;;  %s397_s21 = smov [#allocation10]  }
  0x1d   :  { %v78_v2 = vand.u32 2147483647, %v74_v0  ;;  %v79_v3 = vand.u32 2147483647, %v75_v1  ;;  %v112_v12 = vsub.f32 0.0, %v74_v0  ;;  %v113_v13 = vsub.f32 0.0, %v75_v1 }
  0x1e   :  { %v106_v17 = vmin.f32 %v74_v0, 0.0  ;;  %v107_v21 = vmin.f32 %v75_v1, 0.0  ;;  %vm100_vm0 = vcmp.ge.f32.partialorder %v74_v0, 0.0  ;;  %v76_v34 = vld [vmem:[#allocation8] sm:$0xff]  ;;  %vm101_vm1 = vcmp.ge.f32.partialorder %v75_v1, 0.0  ;;  %v77_v37 = vld [vmem:[#allocation8 + $0x8] sm:$0xff] }
  0x1f   :  { %v80_v4 = vsub.f32 0.0, %v78_v2  ;;  %v81_v5 = vsub.f32 0.0, %v79_v3  ;;  %v114_v18 = vmin.f32 %v112_v12, 0.0  ;;  %v115_v22 = vmin.f32 %v113_v13, 0.0  ;;  %s290_s22 = sshll.u32 %s397_s21, 4  ;;  %s291_s22 = int_to_ptr.vmem [resolvable:$true] %s290_s22 }
  0x20   :  { %s367_s24 = scalar_lea.vmem %s291_s22, 128  ;;  %p372_p11 = scmp.lt.s32.totalorder %s291_s22, %s291_s22 }
  0x21   :  { %v82_v6 = vmul.f32 1.442695, %v80_v4  ;;  %v84_v7 = vmul.f32 1.442695, %v81_v5  ;;  %p368_p10 = scmp.ne.s32.totalorder %s291_s22, %s367_s24  ;;  %p373_p12 = scmp.lt.s32.totalorder %s367_s24, %s367_s24 }
  0x23   :  { %315 = vpow2.f32 %v82_v6  ;;  %p374_p13 = por %p373_p12, %p372_p11 }
  0x24   :  { %317 = vpow2.f32 %v84_v7 }
  0x25   :  { %p375_p0 = pnand %p374_p13, %p368_p10 }
  0x30   :  { %v316_v8 = vpop.eup %315 }
  0x31   :  { %v318_v9 = vpop.eup %317  ;;  %v86_v10 = vadd.f32 1.0, %v316_v8 }
  0x32   :  { %v87_v11 = vadd.f32 1.0, %v318_v9 }
  0x33   :  { %319 = vrcp.f32 %v86_v10 }
  0x34   :  { %321 = vrcp.f32 %v87_v11 }
  0x35   :  { %323 = vlog2.f32 %v86_v10 }
  0x36   :  { %325 = vlog2.f32 %v87_v11 }
  0x40   :  { %v320_v14 = vpop.eup %319 }
  0x41   :  { %v322_v15 = vpop.eup %321  ;;  %v90_v16 = vmul.f32 %v320_v14, %v86_v10 }
  0x42   :  { %v324_v19 = vpop.eup %323  ;;  %v91_v20 = vmul.f32 %v322_v15, %v87_v11 }
  0x43   :  { %v326_v23 = vpop.eup %325  ;;  %v92_v24 = vsub.f32 2.0, %v90_v16  ;;  %v97_v25 = vmul.f32 0.6931472, %v324_v19  ;;  %v266_v16 = vlaneseq }
  0x44   :  { %v93_v26 = vsub.f32 2.0, %v91_v20  ;;  %v99_v27 = vmul.f32 0.6931472, %v326_v23 }
  0x45   :  { %v94_v28 = vmul.f32 %v320_v14, %v92_v24  ;;  %v108_v29 = vsub.f32 %v106_v17, %v97_v25  ;;  %v116_v30 = vsub.f32 %v114_v18, %v97_v25  ;;  %v267_v17 = vshrl.u32 %v266_v16, 7 }
  0x46   :  { %v95_v31 = vmul.f32 %v322_v15, %v93_v26  ;;  %v109_v32 = vsub.f32 %v107_v21, %v99_v27  ;;  %v117_v33 = vsub.f32 %v115_v22, %v99_v27  ;;  %v269_v18 = vand.u32 127, %v266_v16 }
  0x47   :  { %v102_v35 = vmul.f32 %v316_v8, %v94_v28  ;;  %v118_v36 = vmax.f32 %v116_v30, -100.0  ;;  %v110_v39 = vmax.f32 %v108_v29, -100.0  ;;  %vm270_vm4 = vcmp.eq.s32.totalorder %v267_v17, 0 }
  0x48   :  { %v103_v38 = vmul.f32 %v318_v9, %v95_v31  ;;  %v119_v40 = vmax.f32 %v117_v33, -100.0  ;;  %v111_v42 = vmax.f32 %v109_v32, -100.0  ;;  %vm271_vm5 = vcmp.eq.s32.totalorder %v269_v18, 0 }
  0x49   :  { %v104_v41 = vsel %vm100_vm0, %v94_v28, %v102_v35  ;;  %vm275_vm6 = vcmp.eq.s32.totalorder %v269_v18, 1  ;;  %vm272_vm7 = vmand %vm270_vm4, %vm271_vm5  ;;  %vm279_vm8 = vcmp.eq.s32.totalorder %v269_v18, 2 }
  0x4a   :  { %v105_v43 = vsel %vm101_vm1, %v95_v31, %v103_v38  ;;  %v125_v44 = vmul.f32 %v104_v41, %v76_v34  ;;  %v131_v45 = vadd.f32 %v104_v41, %v76_v34  ;;  %vm120_vm2 = vcmp.ge.f32.partialorder %v104_v41, 1.0  ;;  %vm276_vm9 = vmand %vm270_vm4, %vm275_vm6 }
  0x4b   :  { %v126_v46 = vmul.f32 %v105_v43, %v77_v37  ;;  %v132_v47 = vadd.f32 %v105_v43, %v77_v37  ;;  %vm121_vm3 = vcmp.ge.f32.partialorder %v105_v43, 1.0  ;;  %v122_v48 = vsel %vm120_vm2, -100.0, %v118_v36  ;;  %vm280_vm10 = vmand %vm270_vm4, %vm279_vm8 }
  0x4c   :  { %v123_v49 = vsel %vm121_vm3, -100.0, %v119_v40  ;;  %v137_v50 = vsub.f32 %v110_v39, %v122_v48 }
  0x4d   :  { %v127_v51 = vadd.f32 %v126_v46, %v125_v44  ;;  %v138_v52 = vsub.f32 %v111_v42, %v123_v49  ;;  %v133_v54 = vadd.f32 %v132_v47, %v131_v45 }
  0x4e   :  { %v139_v53 = vmul.f32 %v137_v50, %v76_v34 }
  0x4f   :  { %237 = vadd.xlane.f32.xlu0 %v127_v51  ;;  %v140_v55 = vmul.f32 %v138_v52, %v77_v37 }
  0x50   :  { %v141_v56 = vadd.f32 %v139_v53, %v122_v48 }
  0x51   :  { %v142_v57 = vadd.f32 %v140_v55, %v123_v49 }
  0x53   :  { %247 = vadd.xlane.f32.xlu0 %v133_v54  ;;  %v143_v58 = vadd.f32 %v142_v57, %v141_v56 }
  0x55   :  { %257 = vadd.xlane.f32.xlu1 %v143_v58 }
  0xd8   :  { %v238_v59 = vpop.xlane.xlu0 %237 }
  0xd9   :  { %v239_v60 = vrot.slane %v238_v59, 4 }
  0xdb   :  { %v240_v61 = vadd.f32 %v239_v60, %v238_v59 }
  0xdc   :  { %v248_v62 = vpop.xlane.xlu0 %247 }
  0xdd   :  { %v241_v63 = vrot.slane %v240_v61, 2  ;;  %v249_v0 = vrot.slane %v248_v62, 4 }
  0xde   :  { %v258_v1 = vpop.xlane.xlu1 %257 }
  0xdf   :  { %v250_v2 = vadd.f32 %v249_v0, %v248_v62  ;;  %v259_v3 = vrot.slane %v258_v1, 4  ;;  %v242_v4 = vadd.f32 %v241_v63, %v240_v61 }
  0xe1   :  { %v251_v5 = vrot.slane %v250_v2, 2  ;;  %v260_v6 = vadd.f32 %v259_v3, %v258_v1  ;;  %v243_v7 = vrot.slane %v242_v4, 1 }
  0xe3   :  { %v252_v8 = vadd.f32 %v251_v5, %v250_v2  ;;  %v261_v9 = vrot.slane %v260_v6, 2  ;;  %v244_v10 = vadd.f32 %v243_v7, %v242_v4 }
  0xe5   :  { %v262_v11 = vadd.f32 %v261_v9, %v260_v6  ;;  %304 = vpush %v244_v10  ;;  %v253_v12 = vrot.slane %v252_v8, 1 }
  0xe7   :  { %v254_v13 = vadd.f32 %v253_v12, %v252_v8  ;;  %v263_v14 = vrot.slane %v262_v11, 1 }
  0xe9   :  { %306 = vpush %v254_v13  ;;  %v264_v15 = vadd.f32 %v263_v14, %v262_v11 }
  0xeb   :  { %308 = vpush %v264_v15 }
 0x116   :  { %s305_s0 = spop %304 }
 0x117   :  { %v273_v19 = vstv %s305_s0 }
 0x118   :  { %v274_v20 = vsel %vm272_vm7, %v273_v19, 0.0 }
 0x11a   :  { %s307_s1 = spop %306 }
 0x11b   :  { %v277_v21 = vstv %s307_s1 }
 0x11c   :  { %v278_v22 = vsel %vm276_vm9, %v277_v21, %v274_v20  ;;  %s309_s23 = spop %308 }
 0x11d   :  { %v281_v23 = vstv %s309_s23 }
 0x11e   :  { %v282_v24 = vsel %vm280_vm10, %v281_v23, %v278_v22 }
 0x11f   :  { %283 = vst [vmem:[#allocation10] sm:$0xff] %v282_v24 }
 0x120   :  { %378 = shalt.err (!%p375_p0)
}
 0x121   :  { %293 = dma.vmem_to_hbm [thread:$0]  %s291_s22, 128, %s424_s2, [#allocation7]  }
 0x122   :  { %391 = dma.done.wait [#allocation7], 128  }
 0x123   :  { %392 = vsyncadd [#allocation7], 4294967168 }
 0x124   :  { %297 = vsyncpa [#allocation6], 1 }
 0x125   :  { %298 = vsyncpa [#allocation9], 1 }
 0x126   :  { %299 = vsyncpa [#allocation7], 1 }

</bundles_post_ra>
